<compile_context>
chip_gen: v6e
topology: v6e:2x2x1
jax: 0.10.0
libtpu: 0.0.40
codegen_flags: <defaults>
</compile_context>

<pallas_src>
import functools
import math

import jax
import jax.numpy as jnp
from jax.experimental import pallas as pl
from jax.experimental.pallas import tpu as pltpu


def _embed_gather_kernel(ids_ref, table_ref, o_ref, buf, sem, *,
                         token_tile: int, sub_tile: int, scale: float):
    """Gather `token_tile` embedding rows from HBM, scale, and store.

    ids_ref  : SMEM (n_pad,) int32        -- all (padded) flattened token ids.
    table_ref: HBM  (vocab, d_model)      -- embedding table (never in VMEM).
    o_ref    : VMEM (token_tile, d_model) -- output tile (auto-pipelined).
    buf      : VMEM (2, sub_tile, d_model) table-dtype double buffer.
    sem      : DMA semaphores, shape (2,) -- one per buffer slot.
    """
    n_sub = token_tile // sub_tile
    base = pl.program_id(0) * token_tile

    def start_sub(s, slot):
        # Issue one row DMA per token of sub-tile `s` into buffer slot `slot`.
        off = base + s * sub_tile

        @pl.loop(0, sub_tile)
        def _(r):
            tok = ids_ref[off + r]
            pltpu.make_async_copy(
                table_ref.at[pl.ds(tok, 1), :],
                buf.at[slot, pl.ds(r, 1), :],
                sem.at[slot],
            ).start()

    def wait_sub(slot):
        # Wait for every row copy of this slot (descriptors match the starts).
        @pl.loop(0, sub_tile)
        def _(r):
            pltpu.make_async_copy(
                table_ref.at[pl.ds(0, 1), :],
                buf.at[slot, pl.ds(r, 1), :],
                sem.at[slot],
            ).wait()

    # Prime with this step's first sub-tile.  Priming is local to the body, so
    # it works unchanged when the grid axis is split across TensorCores.
    start_sub(0, 0)

    @pl.loop(0, n_sub)
    def _(s):
        slot = s & 1

        # Overlap: start fetching the next sub-tile into the other slot while
        # we wait on / store the current one.
        @pl.when(s + 1 < n_sub)
        def _():
            start_sub(s + 1, 1 - slot)

        wait_sub(slot)

        rows = buf[slot].astype(jnp.float32) * jnp.float32(scale)  # exact f32 scale
        off = pl.multiple_of(s * sub_tile, sub_tile)
        o_ref[pl.ds(off, sub_tile), :] = rows.astype(o_ref.dtype)


def _vmem_budget_bytes() -> int:
    """Generation-aware VMEM budget (v7x: 64 MiB shared by 2 TCs; v5e/v6e: 128 MiB)."""
    cap = 64 << 20
    try:  # narrow probe only; never wraps the pallas_call itself
        info = pltpu.get_tpu_info()
        cap = int(getattr(info, "vmem_capacity_bytes", 0)) or cap
    except Exception:
        pass
    return (24 << 20) if cap <= (64 << 20) else (40 << 20)


def input_embeddings_forward(x, embedding_table, *, token_tile: int = 256,
                             out_dtype=jnp.float32):
    """x: (batch, seq) integer token ids; embedding_table: (vocab, d_model).

    Returns (batch, seq, d_model) `out_dtype` = embedding_table[x] * sqrt(d_model).
    """
    batch, seq = x.shape
    vocab, d_model = embedding_table.shape
    scale = float(d_model) ** 0.5
    n_tok = batch * seq

    # Token tile: multiple of 8 sublanes, capped at the (rounded-up) token count.
    token_tile = max(8, (int(token_tile) // 8) * 8)
    n_round = ((n_tok + 7) // 8) * 8
    token_tile = min(token_tile, n_round)
    sub_tile = math.gcd(token_tile, 128)          # divides token_tile, multiple of 8

    # VMEM sizing: output double-buffer + gather double-buffer + headroom.
    out_isz = jnp.dtype(out_dtype).itemsize
    tab_isz = jnp.dtype(embedding_table.dtype).itemsize

    def estimate(tt, st):
        return 2 * tt * d_model * out_isz + 2 * st * d_model * tab_isz + (1 << 20)

    budget = _vmem_budget_bytes()
    while token_tile > 128 and estimate(token_tile, sub_tile) > budget:
        token_tile = max(128, (token_tile // 2 // 8) * 8)
        sub_tile = math.gcd(token_tile, 128)
    vmem_limit = int(min(budget, max(estimate(token_tile, sub_tile) + (8 << 20),
                                     16 << 20)))

    n_pad = pl.cdiv(n_tok, token_tile) * token_tile
    ids = x.reshape(n_tok).astype(jnp.int32)
    if n_pad != n_tok:
        ids = jnp.pad(ids, (0, n_pad - n_tok))    # pad id 0: valid row, sliced off

    kernel = functools.partial(_embed_gather_kernel, token_tile=token_tile,
                               sub_tile=sub_tile, scale=scale)

    grid_spec = pltpu.PrefetchScalarGridSpec(
        num_scalar_prefetch=1,                    # ids -> SMEM
        grid=(n_pad // token_tile,),
        in_specs=[pl.BlockSpec(memory_space=pl.ANY)],   # table stays in HBM
        out_specs=pl.BlockSpec((token_tile, d_model), lambda i, ids_smem: (i, 0)),
        scratch_shapes=[
            pltpu.VMEM((2, sub_tile, d_model), embedding_table.dtype),
            pltpu.SemaphoreType.DMA((2,)),
        ],
    )

    out_flat = pl.pallas_call(
        kernel,
        out_shape=jax.ShapeDtypeStruct((n_pad, d_model), out_dtype),
        grid_spec=grid_spec,
        compiler_params=pltpu.CompilerParams(
            dimension_semantics=("parallel",),    # v7x: split token tiles over 2 TCs
            vmem_limit_bytes=vmem_limit,
        ),
    )(ids, embedding_table)

    if n_pad != n_tok:
        out_flat = out_flat[:n_tok]
    return out_flat.reshape(batch, seq, d_model)


if __name__ == "__main__":
    # Deterministic synthetic parameters + inputs (no checkpoint needed).
    vocab_size = 64
    d_model = 128
    batch, seq = 2, 8

    key = jax.random.PRNGKey(0)
    k_emb, k_ids = jax.random.split(key)
    embedding_table = jax.random.normal(k_emb, (vocab_size, d_model), dtype=jnp.float32)
    x = jax.random.randint(k_ids, (batch, seq), 0, vocab_size, dtype=jnp.int32)

    sqrt_d = jnp.sqrt(jnp.float32(d_model))
    ref = embedding_table[x] * sqrt_d

    # Default path: single grid step, gather + exact f32 scale.
    out = jax.block_until_ready(input_embeddings_forward(x, embedding_table))
    assert out.shape == (batch, seq, d_model)
    assert out.dtype == jnp.float32
    assert jnp.allclose(out, ref, atol=1e-5, rtol=1e-5)

    # Multi-tile + padded path (grid of 4 token tiles, padded rows sliced off).
    x2 = jax.random.randint(jax.random.PRNGKey(1), (3, 67), 0, vocab_size,
                            dtype=jnp.int32)
    ref2 = embedding_table[x2] * sqrt_d
    out2 = jax.block_until_ready(
        input_embeddings_forward(x2, embedding_table, token_tile=64))
    assert jnp.allclose(out2, ref2, atol=1e-5, rtol=1e-5)

    # Single-step path with many double-buffered sub-tiles inside the body.
    out3 = jax.block_until_ready(
        input_embeddings_forward(x2, embedding_table, token_tile=256))
    assert jnp.allclose(out3, ref2, atol=1e-5, rtol=1e-5)

    print("KERNEL_OK")
</pallas_src>

<mosaic_0001>
module attributes {stable_mosaic.version = 11 : i64} {
  func.func @_embed_gather_kernel(%arg0: i32, %arg1: memref<16xi32, #tpu.memory_space<smem>>, %arg2: memref<64x128xf32, #tpu.memory_space<any>>, %arg3: memref<16x128xf32, #tpu.memory_space<vmem>>, %arg4: memref<2x16x128xf32, #tpu.memory_space<vmem>>, %arg5: memref<2x!tpu.dma_semaphore, #tpu.memory_space<semaphore_mem>>) attributes {dimension_semantics = [#tpu.dimension_semantics<parallel>], iteration_bounds = array<i64: 1>, scalar_prefetch = 1 : i64, scratch_operands = 2 : i64, tpu.core_type = #tpu.core_type<tc>, window_params = [{}, {transform_indices = @transform_1, window_bounds = array<i64: 16, 128>}]} {
    %c16_i32 = arith.constant 16 : i32
    %0 = arith.muli %arg0, %c16_i32 : i32
    %c0_i32 = arith.constant 0 : i32
    %1 = arith.addi %0, %c0_i32 : i32
    %c0_i32_0 = arith.constant 0 : i32
    %c16_i32_1 = arith.constant 16 : i32
    %2 = arith.addi %c0_i32_0, %c16_i32_1 : i32
    %c1_i32 = arith.constant 1 : i32
    scf.for %arg6 = %c0_i32_0 to %2 step %c1_i32  : i32 {
      %c1_i32_18 = arith.constant 1 : i32
      %20 = arith.muli %arg6, %c1_i32_18 : i32
      %c0_i32_19 = arith.constant 0 : i32
      %21 = arith.addi %c0_i32_19, %20 : i32
      %22 = arith.addi %1, %21 : i32
      %23 = arith.index_cast %22 : i32 to index
      %24 = memref.load %arg1[%23] : memref<16xi32, #tpu.memory_space<smem>>
      %c0_i32_20 = arith.constant 0 : i32
      %c0_i32_21 = arith.constant 0 : i32
      %c0_i32_22 = arith.constant 0 : i32
      %25 = tpu.memref_slice %arg2[%24, %c0_i32_22] : memref<64x128xf32, #tpu.memory_space<any>> -> memref<1x128xf32, #tpu.memory_space<any>>
      %c0_i32_23 = arith.constant 0 : i32
      %26 = tpu.memref_slice %arg4[%c0_i32_20, %21, %c0_i32_23] : memref<2x16x128xf32, #tpu.memory_space<vmem>> -> memref<1x1x128xf32, #tpu.memory_space<vmem>>
      %27 = tpu.memref_squeeze %26 : memref<1x1x128xf32, #tpu.memory_space<vmem>> -> memref<1x128xf32, #tpu.memory_space<vmem>>
      %28 = tpu.memref_slice %arg5[%c0_i32_21] : memref<2x!tpu.dma_semaphore, #tpu.memory_space<semaphore_mem>> -> memref<1x!tpu.dma_semaphore, #tpu.memory_space<semaphore_mem>>
      %29 = tpu.memref_squeeze %28 : memref<1x!tpu.dma_semaphore, #tpu.memory_space<semaphore_mem>> -> memref<!tpu.dma_semaphore, #tpu.memory_space<semaphore_mem>>
      tpu.enqueue_dma source(%25 : memref<1x128xf32, #tpu.memory_space<any>>) target(%27 : memref<1x128xf32, #tpu.memory_space<vmem>>) target_semaphore(%29 : memref<!tpu.dma_semaphore, #tpu.memory_space<semaphore_mem>>)
    }
    %c16_i32_2 = arith.constant 16 : i32
    %c0_i32_3 = arith.constant 0 : i32
    %c1_i32_4 = arith.constant 1 : i32
    %3 = arith.muli %c0_i32_3, %c1_i32_4 : i32
    %c0_i32_5 = arith.constant 0 : i32
    %4 = arith.addi %c0_i32_5, %3 : i32
    %c1_i32_6 = arith.constant 1 : i32
    %5 = arith.andi %4, %c1_i32_6 : i32
    %c1_i32_7 = arith.constant 1 : i32
    %6 = arith.addi %4, %c1_i32_7 : i32
    %c1_i32_8 = arith.constant 1 : i32
    %7 = arith.cmpi slt, %6, %c1_i32_8 : i32
    %8 = arith.extui %7 : i1 to i32
    %c0_i32_9 = arith.constant 0 : i32
    %9 = arith.cmpi ne, %8, %c0_i32_9 : i32
    scf.if %9 {
      %c1_i32_18 = arith.constant 1 : i32
      %20 = arith.addi %4, %c1_i32_18 : i32
      %c1_i32_19 = arith.constant 1 : i32
      %21 = arith.subi %c1_i32_19, %5 : i32
      %c16_i32_20 = arith.constant 16 : i32
      %22 = arith.muli %20, %c16_i32_20 : i32
      %23 = arith.addi %0, %22 : i32
      %c0_i32_21 = arith.constant 0 : i32
      %c16_i32_22 = arith.constant 16 : i32
      %24 = arith.addi %c0_i32_21, %c16_i32_22 : i32
      %c1_i32_23 = arith.constant 1 : i32
      scf.for %arg6 = %c0_i32_21 to %24 step %c1_i32_23  : i32 {
        %c1_i32_25 = arith.constant 1 : i32
        %25 = arith.muli %arg6, %c1_i32_25 : i32
        %c0_i32_26 = arith.constant 0 : i32
        %26 = arith.addi %c0_i32_26, %25 : i32
        %27 = arith.addi %23, %26 : i32
        %28 = arith.index_cast %27 : i32 to index
        %29 = memref.load %arg1[%28] : memref<16xi32, #tpu.memory_space<smem>>
        %c0_i32_27 = arith.constant 0 : i32
        %30 = tpu.memref_slice %arg2[%29, %c0_i32_27] : memref<64x128xf32, #tpu.memory_space<any>> -> memref<1x128xf32, #tpu.memory_space<any>>
        %c0_i32_28 = arith.constant 0 : i32
        %31 = tpu.memref_slice %arg4[%21, %26, %c0_i32_28] : memref<2x16x128xf32, #tpu.memory_space<vmem>> -> memref<1x1x128xf32, #tpu.memory_space<vmem>>
        %32 = tpu.memref_squeeze %31 : memref<1x1x128xf32, #tpu.memory_space<vmem>> -> memref<1x128xf32, #tpu.memory_space<vmem>>
        %33 = tpu.memref_slice %arg5[%21] : memref<2x!tpu.dma_semaphore, #tpu.memory_space<semaphore_mem>> -> memref<1x!tpu.dma_semaphore, #tpu.memory_space<semaphore_mem>>
        %34 = tpu.memref_squeeze %33 : memref<1x!tpu.dma_semaphore, #tpu.memory_space<semaphore_mem>> -> memref<!tpu.dma_semaphore, #tpu.memory_space<semaphore_mem>>
        tpu.enqueue_dma source(%30 : memref<1x128xf32, #tpu.memory_space<any>>) target(%32 : memref<1x128xf32, #tpu.memory_space<vmem>>) target_semaphore(%34 : memref<!tpu.dma_semaphore, #tpu.memory_space<semaphore_mem>>)
      }
      %c16_i32_24 = arith.constant 16 : i32
    } else {
    }
    %c0_i32_10 = arith.constant 0 : i32
    %c16_i32_11 = arith.constant 16 : i32
    %10 = arith.addi %c0_i32_10, %c16_i32_11 : i32
    %c1_i32_12 = arith.constant 1 : i32
    scf.for %arg6 = %c0_i32_10 to %10 step %c1_i32_12  : i32 {
      %c1_i32_18 = arith.constant 1 : i32
      %20 = arith.muli %arg6, %c1_i32_18 : i32
      %c0_i32_19 = arith.constant 0 : i32
      %21 = arith.addi %c0_i32_19, %20 : i32
      %c0_i32_20 = arith.constant 0 : i32
      %c0_i32_21 = arith.constant 0 : i32
      %22 = tpu.memref_slice %arg2[%c0_i32_20, %c0_i32_21] : memref<64x128xf32, #tpu.memory_space<any>> -> memref<1x128xf32, #tpu.memory_space<any>>
      %c0_i32_22 = arith.constant 0 : i32
      %23 = tpu.memref_slice %arg4[%5, %21, %c0_i32_22] : memref<2x16x128xf32, #tpu.memory_space<vmem>> -> memref<1x1x128xf32, #tpu.memory_space<vmem>>
      %24 = tpu.memref_squeeze %23 : memref<1x1x128xf32, #tpu.memory_space<vmem>> -> memref<1x128xf32, #tpu.memory_space<vmem>>
      %25 = tpu.memref_slice %arg5[%5] : memref<2x!tpu.dma_semaphore, #tpu.memory_space<semaphore_mem>> -> memref<1x!tpu.dma_semaphore, #tpu.memory_space<semaphore_mem>>
      %26 = tpu.memref_squeeze %25 : memref<1x!tpu.dma_semaphore, #tpu.memory_space<semaphore_mem>> -> memref<!tpu.dma_semaphore, #tpu.memory_space<semaphore_mem>>
      tpu.wait_dma2 semaphore(%26 : memref<!tpu.dma_semaphore, #tpu.memory_space<semaphore_mem>>) src(%22 : memref<1x128xf32, #tpu.memory_space<any>>) dst(%24 : memref<1x128xf32, #tpu.memory_space<vmem>>)
    }
    %c16_i32_13 = arith.constant 16 : i32
    %11 = arith.index_cast %5 : i32 to index
    %c0 = arith.constant 0 : index
    %c0_14 = arith.constant 0 : index
    %12 = vector.load %arg4[%11, %c0, %c0_14] : memref<2x16x128xf32, #tpu.memory_space<vmem>>, vector<1x16x128xf32>
    %13 = vector.shape_cast %12 : vector<1x16x128xf32> to vector<16x128xf32>
    %cst = arith.constant 11.3137083 : f32
    %14 = vector.broadcast %cst : f32 to vector<16x128xf32>
    %15 = arith.mulf %13, %14 : vector<16x128xf32>
    %c16_i32_15 = arith.constant 16 : i32
    %16 = arith.muli %4, %c16_i32_15 : i32
    %17 = tpu.assume_multiple %16, 16 : i32
    %18 = arith.index_cast %17 : i32 to index
    %c0_16 = arith.constant 0 : index
    %19 = vector.load %arg3[%18, %c0_16] : memref<16x128xf32, #tpu.memory_space<vmem>>, vector<16x128xf32>
    tpu.vector_store %arg3[%18, %c0_16], %15 {strides = array<i32>} : memref<16x128xf32, #tpu.memory_space<vmem>>, vector<16x128xf32>,
    %c1_i32_17 = arith.constant 1 : i32
    return
  }
  func.func @transform_1(%arg0: i32, %arg1: memref<16xi32, #tpu.memory_space<smem>>) -> (i32, i32) {
    %c0_i32 = arith.constant 0 : i32
    %c0_i32_0 = arith.constant 0 : i32
    return %arg0, %c0_i32 : i32, i32
  }
}

</mosaic_0001>

<bundles_post_ra>
// kernel: tpu_custom_call.1
= control target key start
LH: loop header
LB: loop body
LE: loop exit
PB: predicated region body
PF: predicated region fallthrough
CT: control target
= control target key end

     0   :  { %s187_s9 = smov [#allocation5]   ;;  %s232_s0 = inlined_call_operand.hbm [shape: s32[16], index: 0, kind: input, shape index: {}]   ;;  %s233_s1 = inlined_call_operand.hbm [shape: f32[64,128], index: 1, kind: input, shape index: {}]   ;;  %s234_s2 = inlined_call_operand.hbm [shape: f32[16,128], index: 2, kind: output, shape index: {}]  }
   0x1   :  { %8 = dma.hbm_to_smem %s232_s0, 16, %s187_s9, [#allocation4] }
   0x2   :  { %173 = dma.done.wait [#allocation4], 16 }
   0x3   :  { %174 = vsyncadd [#allocation4], 4294967280 }
   0x4   :  { %10 = sfence }
   0x5   :  { %11 = vsyncpa [#allocation7], 0  ;;  %s210_s12 = smov 0  }
   0x6 LB: > { %s20_s13 = sld [smem:[#allocation5 + %s181_s12]]  ;;  %s23_s14 = scalar_lea.vmem [#allocation2], %s181_s12  ;;  %s181_s12 = sphi %s210_s12, %s18_s12  }
   0x7   : > { %s31_s15 = sshll.u32 %s23_s14, 4  ;;  %s125_s22 = scalar_lea.hbm %s233_s1, 1024  ;;  %s32_s15 = int_to_ptr.vmem [resolvable:$true] %s31_s15 }
   0xc   : > { %s92_s16 = sshll.u32 %s20_s13, 4 }
   0xd   : > { %s22_s18 = scalar_lea.hbm %s233_s1, %s92_s16 }
   0xe   : > { %s123_s19 = scalar_lea.hbm %s22_s18, 16  ;;  %p126_p1 = scmp.lt.s32.totalorder %s22_s18, %s233_s1 }
   0xf   : > { %p124_p0 = scmp.ne.s32.totalorder %s22_s18, %s123_s19  ;;  %p127_p2 = scmp.lt.s32.totalorder %s125_s22, %s123_s19 }
  0x11   : > { %p128_p3 = por %p127_p2, %p126_p1 }
  0x13   : > { %p129_p4 = pnand %p128_p3, %p124_p0 }
  0x15   : > { %132 = shalt.err (!%p129_p4)  }
  0x16   : > { %s133_s25 = scalar_lea.vmem %s32_s15, 16  ;;  %s188_s26 = smov [#allocation2]  }
  0x17   : > { %p134_p5 = scmp.ne.s32.totalorder %s32_s15, %s133_s25  ;;  %s135_s27 = sshll.u32 %s188_s26, 4  ;;  %s136_s27 = int_to_ptr.vmem [resolvable:$false] %s135_s27 }
  0x18   : > { %s137_s28 = scalar_lea.vmem %s136_s27, 512  ;;  %p138_p6 = scmp.lt.s32.totalorder %s32_s15, %s136_s27 }
  0x19   : > { %p139_p7 = scmp.lt.s32.totalorder %s137_s28, %s133_s25 }
  0x1b   : > { %p140_p8 = por %p139_p7, %p138_p6 }
  0x1d   : > { %p141_p9 = pnand %p140_p8, %p134_p5 }
  0x1f   : > { %144 = shalt.err (!%p141_p9)  }
  0x20   : > { %34 = dma.hbm_to_vmem [thread:$0]  %s22_s18, 16, %s32_s15, [#allocation3] }
  0x21   : > { %s18_s12 = sadd.s32 1, %s181_s12  }
  0x22   : > { %p15_p10 = scmp.ge.s32.totalorder %s18_s12, 16  }
  0x23   :  { %s183_s29 = smov (%p15_p10), 0  }
  0x24   :  { %17 = sbr.rel (!%p15_p10) target bundleno = 6 (0x6), region = 41 }
  0x29 LB: > { %175 = dma.done.wait [#allocation3], 16  ;;  %s185_s29 = sphi %s183_s29, %s40_s29  }
  0x2a   : > { %176 = vsyncadd [#allocation3], 4294967280  ;;  %s40_s29 = sadd.s32 1, %s185_s29  }
  0x2b   : > { %p37_p11 = scmp.ge.s32.totalorder %s40_s29, 16  }
  0x2c   :  { %v44_v0 = vld [vmem:[#allocation2] sm:$0xff] (%p37_p11)  ;;  %v45_v1 = vld [vmem:[#allocation2 + $0x8] sm:$0xff] (%p37_p11)  ;;  %s189_s30 = smov (%p37_p11), [#allocation6]  }
  0x2d   :  { %39 = sbr.rel (!%p37_p11) target bundleno = 41 (0x29), region = 52  ;;  %v46_v2 = vmul.f32 (%p37_p11), 11.313708, %v44_v0  ;;  %v47_v3 = vmul.f32 (%p37_p11), 11.313708, %v45_v1  ;;  %s55_s3 = sshll.u32 (%p37_p11), %s189_s30, 4  ;;  %s56_s3 = int_to_ptr.vmem [resolvable:$true] %s55_s3 }
  0x2e   :  { %s145_s4 = scalar_lea.vmem (%p37_p11), %s56_s3, 256  ;;  %p150_p13 = scmp.lt.s32.totalorder (%p37_p11), %s56_s3, %s56_s3 }
  0x2f   :  { %48 = vst [vmem:[#allocation6] sm:$0xff] (%p37_p11), %v46_v2  ;;  %49 = vst [vmem:[#allocation6 + $0x8] sm:$0xff] (%p37_p11), %v47_v3  ;;  %p146_p12 = scmp.ne.s32.totalorder (%p37_p11), %s56_s3, %s145_s4  ;;  %p151_p0 = scmp.lt.s32.totalorder (%p37_p11), %s145_s4, %s145_s4 }
  0x31   :  { %p152_p1 = por (%p37_p11), %p151_p0, %p150_p13 }
  0x33   :  { %p153_p2 = pnand %p152_p1, %p146_p12 }
  0x35   :  { %156 = shalt.err (!%p153_p2)
}
  0x36   :  { %s190_s1 = smov 128   ;;  %s191_s5 = smov 8  }
  0x37   :  { %61 = dma.vmem_to_hbm [thread:$0]  %s56_s3, 256, %s234_s2, [#allocation7], %s190_s1, %s190_s1, %s191_s5  }
  0x38   :  { %177 = dma.done.wait [#allocation7], 256  }
  0x39   :  { %178 = vsyncadd [#allocation7], 4294967040 }
  0x3a   :  { %65 = vsyncpa [#allocation7], 1 }
  0x3b   :  { %66 = vsyncmov [#allocation3] }
  0x3e   :  { %s67_s8 = vpop.sfrf %66 }
  0x3f   :  { %p93_p3 = scmp.ne.s32.totalorder %s67_s8, 0 }
  0x41   :  { %71 = shalt.err (%p93_p3)  }
  0x42   :  { %73 = vsyncmov [#allocation3 + $0x1] }
  0x45   :  { %s74_s9 = vpop.sfrf %73 }
  0x46   :  { %p94_p4 = scmp.ne.s32.totalorder %s74_s9, 0 }
  0x48   :  { %78 = shalt.err (%p94_p4)  }

</bundles_post_ra>
